<compile_context>
chip_gen: v7x
topology: tpu7x:2x2x1
jax: 0.10.0
libtpu: 0.0.40
codegen_flags: <defaults>
</compile_context>

<pallas_src>
import functools

import jax
import jax.numpy as jnp
import numpy as np
from jax import lax
from jax.experimental import pallas as pl
from jax.experimental.pallas import tpu as pltpu


# ------------------------------ fused kernel ------------------------------- #

def fused_triplet_kernel(ids_ref, tbl_ref, w_ref, b_ref, emb_ref, loss_ref,
                         *, batch, seq_len, pad_token_id, temperature, eps):
    """Embedding lookup + synthetic encoder + masked mean pool + triplet loss."""
    n_tokens, _ = ids_ref.shape            # N = 3 * B * L
    vocab, _ = tbl_ref.shape
    hidden_dim = w_ref.shape[1]
    groups = n_tokens // seq_len           # 3 * B pooled rows

    ids = ids_ref[...]                     # (N, 1) int32

    # ---- in-kernel embedding lookup: one-hot (N, V) @ table (V, D) on MXU ----
    vocab_iota = lax.broadcasted_iota(jnp.int32, (n_tokens, vocab), 1)
    one_hot = (ids == vocab_iota).astype(jnp.float32)                      # (N, V)
    x = jnp.dot(one_hot, tbl_ref[...], preferred_element_type=jnp.float32)  # (N, D)

    # ---- synthetic encoder: tanh(x @ W + b); bf16 MXU inputs, f32 accumulate ----
    h = jnp.dot(x.astype(jnp.bfloat16), w_ref[...].astype(jnp.bfloat16),
                preferred_element_type=jnp.float32)
    h = jnp.tanh(h + b_ref[...])                                           # (N, H)

    # ---- masked mean pooling via a segment-sum matmul (all 2-D, MXU) ----
    mask = (ids != pad_token_id).astype(jnp.float32)                       # (N, 1)
    h_masked = h * mask                                                    # lane bcast of (N,1)
    col = lax.broadcasted_iota(jnp.int32, (groups, n_tokens), 1)
    row = lax.broadcasted_iota(jnp.int32, (groups, n_tokens), 0)
    offs = col - row * seq_len
    seg = ((offs >= 0) & (offs < seq_len)).astype(jnp.float32)             # (3B, N)
    pooled_sum = jnp.dot(seg, h_masked, preferred_element_type=jnp.float32)  # (3B, H)
    counts = jnp.dot(seg, mask, preferred_element_type=jnp.float32)          # (3B, 1)
    # NOTE: an all-pad row gives counts == 0 -> inf/nan, matching the torch module.
    pooled = pooled_sum * pl.reciprocal(counts, approx=True)               # EUP reciprocal
    emb_ref[...] = pooled

    # ---- TripletSoftmaxContrastLoss (cosine sims + CE with target class 0) ----
    e = pooled[0 * batch:1 * batch]                                        # (B, H)
    p = pooled[1 * batch:2 * batch]                                        # (B, H)
    n = pooled[2 * batch:3 * batch]                                        # (B, H)

    eps2 = eps * eps
    inv_e = lax.rsqrt(jnp.maximum(jnp.sum(e * e, axis=-1, keepdims=True), eps2))  # (B, 1)
    inv_p = lax.rsqrt(jnp.maximum(jnp.sum(p * p, axis=-1, keepdims=True), eps2))  # (B, 1)
    ones_row = jnp.ones((1, hidden_dim), jnp.float32)
    nn_sq = lax.dot_general(ones_row, n * n, (((1,), (1,)), ((), ())),
                            preferred_element_type=jnp.float32)            # (1, B)
    inv_n = lax.rsqrt(jnp.maximum(nn_sq, eps2))                            # (1, B)

    inv_t = 1.0 / temperature
    # positive logits: cos(e_i, p_i) / T -> (B, 1)
    logit_pos = jnp.sum(e * p, axis=-1, keepdims=True) * inv_e * inv_p * inv_t
    # negative logits: cos(e_i, n_j) / T -> (B, B); normalize the small matrix,
    # not the full (B, H) tensors.
    en = lax.dot_general(e, n, (((1,), (1,)), ((), ())),
                         preferred_element_type=jnp.float32)
    logit_neg = en * inv_e * inv_n * inv_t

    # cross-entropy with target column 0 of cat([logit_pos, logit_neg], axis=1),
    # without materializing the concat: loss_i = logsumexp(row_i) - logit_pos_i
    m = jnp.maximum(logit_pos, jnp.max(logit_neg, axis=-1, keepdims=True))
    lse = m + jnp.log(jnp.exp(logit_pos - m)
                      + jnp.sum(jnp.exp(logit_neg - m), axis=-1, keepdims=True))
    per_example = lse - logit_pos                                          # (B, 1)
    loss = jnp.sum(per_example, axis=0, keepdims=True) * (1.0 / batch)     # (1, 1)
    loss_ref[...] = jnp.broadcast_to(loss, loss_ref.shape)                 # lane-dense store


# ------------------------------ JAX wrappers ------------------------------- #

def fused_triplet_forward(params, text_ids, text_pos_ids, text_neg_ids,
                          temperature=0.05, pad_token_id=0):
    """Single fused pallas_call. Returns (loss, embeddings (3, B, H))."""
    tbl, w, b = params["embedding_table"], params["w"], params["b"]
    B, L = text_ids.shape
    V, D = tbl.shape
    H = w.shape[1]
    N = 3 * B * L
    G = 3 * B

    ids = jnp.stack([text_ids, text_pos_ids, text_neg_ids], axis=0)
    ids = ids.reshape(N, 1).astype(jnp.int32)          # (N, 1) column of token ids

    kernel = functools.partial(
        fused_triplet_kernel, batch=B, seq_len=L,
        pad_token_id=pad_token_id, temperature=temperature, eps=1e-8)

    pooled, loss_row = pl.pallas_call(
        kernel,
        out_shape=(jax.ShapeDtypeStruct((G, H), jnp.float32),
                   jax.ShapeDtypeStruct((1, 128), jnp.float32)),
        grid=(1,),
        in_specs=[
            pl.BlockSpec((N, 1), lambda i: (0, 0)),    # token ids
            pl.BlockSpec((V, D), lambda i: (0, 0)),    # embedding table
            pl.BlockSpec((D, H), lambda i: (0, 0)),    # encoder weight
            pl.BlockSpec((1, H), lambda i: (0, 0)),    # encoder bias
        ],
        out_specs=(
            pl.BlockSpec((G, H), lambda i: (0, 0)),    # pooled embeddings (lane-dense)
            pl.BlockSpec((1, 128), lambda i: (0, 0)),  # loss (lane-dense row)
        ),
        compiler_params=pltpu.CompilerParams(dimension_semantics=("arbitrary",)),
    )(ids, tbl, w, b.reshape(1, H))

    loss = loss_row[0, 0]
    embeddings = pooled.reshape(3, B, H)
    return loss, embeddings


def embedder_for_triplet_train_forward(params, text_ids, text_pos_ids, text_neg_ids,
                                       temperature=0.05, pad_token_id=0):
    """EmbedderForTripletTrain.forward -> {'loss': scalar}."""
    loss, _ = fused_triplet_forward(params, text_ids, text_pos_ids, text_neg_ids,
                                    temperature=temperature, pad_token_id=pad_token_id)
    return {"loss": loss}


# --------------------------- pure-JAX references ---------------------------- #

def _reference(params, text_ids, text_pos_ids, text_neg_ids,
               temperature=0.05, pad_token_id=0, bf16_mxu=False):
    """f32 reference; bf16_mxu=True mirrors the kernel's bf16 MXU-input policy."""
    w = params["w"]

    def emb_fn(ids):
        x = jnp.take(params["embedding_table"], ids, axis=0)
        if bf16_mxu:
            pre = jnp.dot(x.astype(jnp.bfloat16), w.astype(jnp.bfloat16),
                          preferred_element_type=jnp.float32)
        else:
            pre = jnp.dot(x, w)
        h = jnp.tanh(pre + params["b"])
        m = (ids != pad_token_id).astype(jnp.float32)
        return jnp.sum(h * m[:, :, None], axis=1) / jnp.sum(m, axis=1, keepdims=True)

    def cos(a, b_):
        na = jnp.maximum(jnp.linalg.norm(a, axis=-1), 1e-8)
        nb = jnp.maximum(jnp.linalg.norm(b_, axis=-1), 1e-8)
        return jnp.sum(a * b_, axis=-1) / (na * nb)

    e, p, n = emb_fn(text_ids), emb_fn(text_pos_ids), emb_fn(text_neg_ids)
    sim_pos = cos(e, p)[:, None]
    sim_neg = cos(e[:, None, :], n[None, :, :])
    logits = jnp.concatenate([sim_pos, sim_neg], axis=1) / temperature
    lse = jax.scipy.special.logsumexp(logits, axis=1)
    loss = jnp.mean(lse - logits[:, 0])
    return loss, jnp.stack([e, p, n], axis=0)


# ---------------------------------- main ------------------------------------ #

if __name__ == "__main__":
    B, L, D, H, VOCAB = 8, 8, 128, 128, 64
    PAD = 0
    TEMPERATURE = 0.05

    key = jax.random.PRNGKey(0)
    k_tbl, k_w, k_b, k_a, k_p, k_n = jax.random.split(key, 6)

    params = {
        "embedding_table": 0.02 * jax.random.normal(k_tbl, (VOCAB, D), jnp.float32),
        "w": 0.05 * jax.random.normal(k_w, (D, H), jnp.float32),
        "b": 0.01 * jax.random.normal(k_b, (H,), jnp.float32),
    }

    def make_ids(k):
        ids = jax.random.randint(k, (B, L), 0, VOCAB, dtype=jnp.int32)
        # ensure at least one non-pad token per row
        return ids.at[:, 0].set(jnp.maximum(ids[:, 0], 1))

    text_ids = make_ids(k_a)
    text_pos_ids = make_ids(k_p)
    text_neg_ids = make_ids(k_n)

    # public forward (as in the original module)
    out = embedder_for_triplet_train_forward(
        params, text_ids, text_pos_ids, text_neg_ids,
        temperature=TEMPERATURE, pad_token_id=PAD)
    loss_kernel = jax.block_until_ready(out["loss"])

    # fused call also exposes the pooled embeddings for validation
    _, emb_kernel = fused_triplet_forward(
        params, text_ids, text_pos_ids, text_neg_ids,
        temperature=TEMPERATURE, pad_token_id=PAD)
    emb_kernel = jax.block_until_ready(emb_kernel)

    # reference that mirrors the kernel's deliberate bf16 MXU-input policy (tight)
    ref_loss_bf16, _ = _reference(params, text_ids, text_pos_ids, text_neg_ids,
                                  temperature=TEMPERATURE, pad_token_id=PAD, bf16_mxu=True)
    # pure f32 reference (loose: only deviation is the bf16 MXU inputs)
    ref_loss_f32, ref_emb_f32 = _reference(params, text_ids, text_pos_ids, text_neg_ids,
                                           temperature=TEMPERATURE, pad_token_id=PAD,
                                           bf16_mxu=False)

    np.testing.assert_allclose(np.asarray(loss_kernel), np.asarray(ref_loss_bf16),
                               rtol=5e-3, atol=5e-3)
    np.testing.assert_allclose(np.asarray(loss_kernel), np.asarray(ref_loss_f32),
                               rtol=3e-2, atol=3e-2)
    np.testing.assert_allclose(np.asarray(emb_kernel), np.asarray(ref_emb_f32),
                               rtol=2e-2, atol=3e-4)

    print("KERNEL_OK")
</pallas_src>

<mosaic_0001>
module attributes {stable_mosaic.version = 11 : i64} {
  func.func @fused_triplet_kernel(%arg0: i32, %arg1: memref<192x1xi32, #tpu.memory_space<vmem>>, %arg2: memref<64x128xf32, #tpu.memory_space<vmem>>, %arg3: memref<128x128xf32, #tpu.memory_space<vmem>>, %arg4: memref<1x128xf32, #tpu.memory_space<vmem>>, %arg5: memref<24x128xf32, #tpu.memory_space<vmem>>, %arg6: memref<1x128xf32, #tpu.memory_space<vmem>>) attributes {dimension_semantics = [#tpu.dimension_semantics<arbitrary>], iteration_bounds = array<i64: 1>, scalar_prefetch = 0 : i64, scratch_operands = 0 : i64, tpu.core_type = #tpu.core_type<tc>, window_params = [{pipeline_mode = #tpu.pipeline_mode<synchronous>, transform_indices = @transform_0, window_bounds = array<i64: 192, 1>}, {pipeline_mode = #tpu.pipeline_mode<synchronous>, transform_indices = @transform_1, window_bounds = array<i64: 64, 128>}, {pipeline_mode = #tpu.pipeline_mode<synchronous>, transform_indices = @transform_2, window_bounds = array<i64: 128, 128>}, {pipeline_mode = #tpu.pipeline_mode<synchronous>, transform_indices = @transform_3, window_bounds = array<i64: 1, 128>}, {pipeline_mode = #tpu.pipeline_mode<synchronous>, transform_indices = @transform_4, window_bounds = array<i64: 24, 128>}, {pipeline_mode = #tpu.pipeline_mode<synchronous>, transform_indices = @transform_5, window_bounds = array<i64: 1, 128>}]} {
    %c0 = arith.constant 0 : index
    %c0_0 = arith.constant 0 : index
    %0 = vector.load %arg1[%c0, %c0_0] : memref<192x1xi32, #tpu.memory_space<vmem>>, vector<192x1xi32>
    %1 = tpu.iota {dimensions = array<i32: 1>} : vector<192x64xi32>
    %2 = vector.broadcast %0 : vector<192x1xi32> to vector<192x64xi32>
    %3 = arith.cmpi eq, %2, %1 : vector<192x64xi32>
    %4 = arith.extui %3 : vector<192x64xi1> to vector<192x64xi32>
    %5 = arith.sitofp %4 : vector<192x64xi32> to vector<192x64xf32>
    %c0_1 = arith.constant 0 : index
    %c0_2 = arith.constant 0 : index
    %6 = vector.load %arg2[%c0_1, %c0_2] : memref<64x128xf32, #tpu.memory_space<vmem>>, vector<64x128xf32>
    %cst = arith.constant dense<0.000000e+00> : vector<192x128xf32>
    %7 = tpu.matmul %5, %6, %cst {dimension_numbers = #tpu.dot_dimension_numbers<[1], [0], [0], [1], [0, 0, 1, 1], [], []>} : vector<192x64xf32>, vector<64x128xf32>, vector<192x128xf32> -> vector<192x128xf32>
    %8 = arith.truncf %7 : vector<192x128xf32> to vector<192x128xbf16>
    %c0_3 = arith.constant 0 : index
    %c0_4 = arith.constant 0 : index
    %9 = vector.load %arg3[%c0_3, %c0_4] : memref<128x128xf32, #tpu.memory_space<vmem>>, vector<128x128xf32>
    %10 = arith.truncf %9 : vector<128x128xf32> to vector<128x128xbf16>
    %cst_5 = arith.constant dense<0.000000e+00> : vector<192x128xf32>
    %11 = tpu.matmul %8, %10, %cst_5 {dimension_numbers = #tpu.dot_dimension_numbers<[1], [0], [0], [1], [0, 0, 1, 1], [], []>} : vector<192x128xbf16>, vector<128x128xbf16>, vector<192x128xf32> -> vector<192x128xf32>
    %c0_6 = arith.constant 0 : index
    %c0_7 = arith.constant 0 : index
    %12 = vector.load %arg4[%c0_6, %c0_7] : memref<1x128xf32, #tpu.memory_space<vmem>>, vector<1x128xf32>
    %13 = vector.broadcast %12 : vector<1x128xf32> to vector<192x128xf32>
    %14 = arith.addf %11, %13 : vector<192x128xf32>
    %15 = math.tanh %14 : vector<192x128xf32>
    %c0_i32 = arith.constant 0 : i32
    %16 = vector.broadcast %c0_i32 : i32 to vector<192x1xi32>
    %17 = arith.cmpi ne, %0, %16 : vector<192x1xi32>
    %18 = arith.extui %17 : vector<192x1xi1> to vector<192x1xi32>
    %19 = arith.sitofp %18 : vector<192x1xi32> to vector<192x1xf32>
    %20 = vector.broadcast %19 : vector<192x1xf32> to vector<192x128xf32>
    %21 = arith.mulf %15, %20 : vector<192x128xf32>
    %22 = tpu.iota {dimensions = array<i32: 1>} : vector<24x192xi32>
    %23 = tpu.iota {dimensions = array<i32: 0>} : vector<24x192xi32>
    %c8_i32 = arith.constant 8 : i32
    %24 = vector.broadcast %c8_i32 : i32 to vector<24x192xi32>
    %25 = arith.muli %23, %24 : vector<24x192xi32>
    %26 = arith.subi %22, %25 : vector<24x192xi32>
    %c0_i32_8 = arith.constant 0 : i32
    %27 = vector.broadcast %c0_i32_8 : i32 to vector<24x192xi32>
    %28 = arith.cmpi sge, %26, %27 : vector<24x192xi32>
    %c8_i32_9 = arith.constant 8 : i32
    %29 = vector.broadcast %c8_i32_9 : i32 to vector<24x192xi32>
    %30 = arith.cmpi slt, %26, %29 : vector<24x192xi32>
    %31 = arith.andi %28, %30 : vector<24x192xi1>
    %32 = arith.extui %31 : vector<24x192xi1> to vector<24x192xi32>
    %33 = arith.sitofp %32 : vector<24x192xi32> to vector<24x192xf32>
    %cst_10 = arith.constant dense<0.000000e+00> : vector<24x128xf32>
    %34 = tpu.matmul %33, %21, %cst_10 {dimension_numbers = #tpu.dot_dimension_numbers<[1], [0], [0], [1], [0, 0, 1, 1], [], []>} : vector<24x192xf32>, vector<192x128xf32>, vector<24x128xf32> -> vector<24x128xf32>
    %cst_11 = arith.constant dense<0.000000e+00> : vector<24x1xf32>
    %35 = tpu.matmul %33, %19, %cst_11 {dimension_numbers = #tpu.dot_dimension_numbers<[1], [0], [0], [1], [0, 0, 1, 1], [], []>} : vector<24x192xf32>, vector<192x1xf32>, vector<24x1xf32> -> vector<24x1xf32>
    %36 = tpu.reciprocal %35 {approx = true} : vector<24x1xf32> -> vector<24x1xf32>
    %37 = vector.broadcast %36 : vector<24x1xf32> to vector<24x128xf32>
    %38 = arith.mulf %34, %37 : vector<24x128xf32>
    %c0_12 = arith.constant 0 : index
    %c0_13 = arith.constant 0 : index
    %39 = vector.load %arg5[%c0_12, %c0_13] : memref<24x128xf32, #tpu.memory_space<vmem>>, vector<24x128xf32>
    tpu.vector_store %arg5[%c0_12, %c0_13], %38 {strides = array<i32>} : memref<24x128xf32, #tpu.memory_space<vmem>>, vector<24x128xf32>,
    %40 = vector.extract_strided_slice %38 {offsets = [0, 0], sizes = [8, 128], strides = [1, 1]} : vector<24x128xf32> to vector<8x128xf32>
    %41 = vector.extract_strided_slice %38 {offsets = [8, 0], sizes = [8, 128], strides = [1, 1]} : vector<24x128xf32> to vector<8x128xf32>
    %42 = vector.extract_strided_slice %38 {offsets = [16, 0], sizes = [8, 128], strides = [1, 1]} : vector<24x128xf32> to vector<8x128xf32>
    %43 = arith.mulf %40, %40 : vector<8x128xf32>
    %cst_14 = arith.constant dense<0.000000e+00> : vector<8xf32>
    %44 = vector.multi_reduction <add>, %43, %cst_14 [1] : vector<8x128xf32> to vector<8xf32>
    %45 = vector.shape_cast %44 : vector<8xf32> to vector<8x1xf32>
    %cst_15 = arith.constant 1.000000e-16 : f32
    %46 = vector.broadcast %cst_15 : f32 to vector<8x1xf32>
    %47 = arith.maximumf %45, %46 : vector<8x1xf32>
    %48 = math.rsqrt %47 : vector<8x1xf32>
    %49 = arith.mulf %41, %41 : vector<8x128xf32>
    %cst_16 = arith.constant dense<0.000000e+00> : vector<8xf32>
    %50 = vector.multi_reduction <add>, %49, %cst_16 [1] : vector<8x128xf32> to vector<8xf32>
    %51 = vector.shape_cast %50 : vector<8xf32> to vector<8x1xf32>
    %cst_17 = arith.constant 1.000000e-16 : f32
    %52 = vector.broadcast %cst_17 : f32 to vector<8x1xf32>
    %53 = arith.maximumf %51, %52 : vector<8x1xf32>
    %54 = math.rsqrt %53 : vector<8x1xf32>
    %cst_18 = arith.constant 1.000000e+00 : f32
    %55 = vector.broadcast %cst_18 : f32 to vector<1x128xf32>
    %56 = arith.mulf %42, %42 : vector<8x128xf32>
    %cst_19 = arith.constant dense<0.000000e+00> : vector<1x8xf32>
    %57 = tpu.matmul %55, %56, %cst_19 {dimension_numbers = #tpu.dot_dimension_numbers<[1], [1], [0], [0], [0, 0, 1, 0], [], []>} : vector<1x128xf32>, vector<8x128xf32>, vector<1x8xf32> -> vector<1x8xf32>
    %cst_20 = arith.constant 1.000000e-16 : f32
    %58 = vector.broadcast %cst_20 : f32 to vector<1x8xf32>
    %59 = arith.maximumf %57, %58 : vector<1x8xf32>
    %60 = math.rsqrt %59 : vector<1x8xf32>
    %61 = arith.mulf %40, %41 : vector<8x128xf32>
    %cst_21 = arith.constant dense<0.000000e+00> : vector<8xf32>
    %62 = vector.multi_reduction <add>, %61, %cst_21 [1] : vector<8x128xf32> to vector<8xf32>
    %63 = vector.shape_cast %62 : vector<8xf32> to vector<8x1xf32>
    %64 = arith.mulf %63, %48 : vector<8x1xf32>
    %65 = arith.mulf %64, %54 : vector<8x1xf32>
    %cst_22 = arith.constant 2.000000e+01 : f32
    %66 = vector.broadcast %cst_22 : f32 to vector<8x1xf32>
    %67 = arith.mulf %65, %66 : vector<8x1xf32>
    %cst_23 = arith.constant dense<0.000000e+00> : vector<8x8xf32>
    %68 = tpu.matmul %40, %42, %cst_23 {dimension_numbers = #tpu.dot_dimension_numbers<[1], [1], [0], [0], [0, 0, 1, 0], [], []>} : vector<8x128xf32>, vector<8x128xf32>, vector<8x8xf32> -> vector<8x8xf32>
    %69 = vector.broadcast %48 : vector<8x1xf32> to vector<8x8xf32>
    %70 = arith.mulf %68, %69 : vector<8x8xf32>
    %71 = vector.broadcast %60 : vector<1x8xf32> to vector<8x8xf32>
    %72 = arith.mulf %70, %71 : vector<8x8xf32>
    %cst_24 = arith.constant 2.000000e+01 : f32
    %73 = vector.broadcast %cst_24 : f32 to vector<8x8xf32>
    %74 = arith.mulf %72, %73 : vector<8x8xf32>
    %cst_25 = arith.constant dense<0xFF800000> : vector<8xf32>
    %75 = vector.multi_reduction <maximumf>, %74, %cst_25 [1] : vector<8x8xf32> to vector<8xf32>
    %76 = vector.shape_cast %75 : vector<8xf32> to vector<8x1xf32>
    %77 = arith.maximumf %67, %76 : vector<8x1xf32>
    %78 = arith.subf %67, %77 : vector<8x1xf32>
    %79 = math.exp %78 : vector<8x1xf32>
    %80 = vector.broadcast %77 : vector<8x1xf32> to vector<8x8xf32>
    %81 = arith.subf %74, %80 : vector<8x8xf32>
    %82 = math.exp %81 : vector<8x8xf32>
    %cst_26 = arith.constant dense<0.000000e+00> : vector<8xf32>
    %83 = vector.multi_reduction <add>, %82, %cst_26 [1] : vector<8x8xf32> to vector<8xf32>
    %84 = vector.shape_cast %83 : vector<8xf32> to vector<8x1xf32>
    %85 = arith.addf %79, %84 : vector<8x1xf32>
    %86 = math.log %85 : vector<8x1xf32>
    %87 = arith.addf %77, %86 : vector<8x1xf32>
    %88 = arith.subf %87, %67 : vector<8x1xf32>
    %cst_27 = arith.constant dense<0.000000e+00> : vector<1xf32>
    %89 = vector.multi_reduction <add>, %88, %cst_27 [0] : vector<8x1xf32> to vector<1xf32>
    %90 = vector.shape_cast %89 : vector<1xf32> to vector<1x1xf32>
    %cst_28 = arith.constant 1.250000e-01 : f32
    %91 = vector.broadcast %cst_28 : f32 to vector<1x1xf32>
    %92 = arith.mulf %90, %91 : vector<1x1xf32>
    %93 = vector.shape_cast %92 : vector<1x1xf32> to vector<1x1xf32>
    %94 = vector.broadcast %93 : vector<1x1xf32> to vector<1x128xf32>
    %c0_29 = arith.constant 0 : index
    %c0_30 = arith.constant 0 : index
    %95 = vector.load %arg6[%c0_29, %c0_30] : memref<1x128xf32, #tpu.memory_space<vmem>>, vector<1x128xf32>
    tpu.vector_store %arg6[%c0_29, %c0_30], %94 {strides = array<i32>} : memref<1x128xf32, #tpu.memory_space<vmem>>, vector<1x128xf32>,
    return
  }
  func.func @transform_0(%arg0: i32) -> (i32, i32) {
    %c0_i32 = arith.constant 0 : i32
    %c0_i32_0 = arith.constant 0 : i32
    %c0_i32_1 = arith.constant 0 : i32
    return %c0_i32, %c0_i32_0 : i32, i32
  }
  func.func @transform_1(%arg0: i32) -> (i32, i32) {
    %c0_i32 = arith.constant 0 : i32
    %c0_i32_0 = arith.constant 0 : i32
    %c0_i32_1 = arith.constant 0 : i32
    return %c0_i32, %c0_i32_0 : i32, i32
  }
  func.func @transform_2(%arg0: i32) -> (i32, i32) {
    %c0_i32 = arith.constant 0 : i32
    %c0_i32_0 = arith.constant 0 : i32
    %c0_i32_1 = arith.constant 0 : i32
    return %c0_i32, %c0_i32_0 : i32, i32
  }
  func.func @transform_3(%arg0: i32) -> (i32, i32) {
    %c0_i32 = arith.constant 0 : i32
    %c0_i32_0 = arith.constant 0 : i32
    %c0_i32_1 = arith.constant 0 : i32
    return %c0_i32, %c0_i32_0 : i32, i32
  }
  func.func @transform_4(%arg0: i32) -> (i32, i32) {
    %c0_i32 = arith.constant 0 : i32
    %c0_i32_0 = arith.constant 0 : i32
    %c0_i32_1 = arith.constant 0 : i32
    return %c0_i32, %c0_i32_0 : i32, i32
  }
  func.func @transform_5(%arg0: i32) -> (i32, i32) {
    %c0_i32 = arith.constant 0 : i32
    %c0_i32_0 = arith.constant 0 : i32
    %c0_i32_1 = arith.constant 0 : i32
    return %c0_i32, %c0_i32_0 : i32, i32
  }
}

</mosaic_0001>

<bundles_post_ra>
// kernel: tpu_custom_call.1
= control target key start
LH: loop header
LB: loop body
LE: loop exit
PB: predicated region body
PF: predicated region fallthrough
CT: control target
= control target key end

     0   :  { %11 = vsyncpa [#allocation3], 0  ;;  %v1877_v3 = vmov 0   ;;  %v2643_v35 = vmov 0  ;;  %v2645_v36 = vmov 0  ;;  %s2593_s0 = inlined_call_operand.vmem [shape: s32[192,1], index: 0, kind: input, shape index: {}]   ;;  %s2594_s1 = inlined_call_operand.vmem [shape: f32[64,128], index: 1, kind: input, shape index: {}]   ;;  %s2595_s2 = inlined_call_operand.vmem [shape: f32[128,128], index: 2, kind: input, shape index: {}]   ;;  %s2596_s3 = inlined_call_operand.vmem [shape: f32[1,128], index: 3, kind: input, shape index: {}]   ;;  %s2597_s4 = inlined_call_operand.hbm [shape: f32[24,128], index: 4, kind: output, shape index: {0}]   ;;  %s2598_s5 = inlined_call_operand.hbm [shape: f32[1,128], index: 5, kind: output, shape index: {1}]  }
   0x1   :  { %v1920_v0 = vld [vmem:[%s2593_s0 + $0x10] sm:$0xff]  ;;  %v1925_v1 = vld [vmem:[%s2593_s0] sm:$0xff]  ;;  %v1930_v2 = vld [vmem:[%s2593_s0 + $0x18] sm:$0xff]  ;;  %1702 = vset.pattern.permute.xlu1 %v1877_v3  ;;  %1701 = vset.pattern.permute.xlu0 %v1877_v3 }
   0x2   :  { %vm2618_vm0 = vcmp.ne.s32.totalorder %v1920_v0, 0  ;;  %vm2614_vm1 = vcmp.ne.s32.totalorder %v1930_v2, 0  ;;  %v1937_v4 = vld [vmem:[%s2593_s0 + $0x8] sm:$0xff]  ;;  %55 = vperm.xlu1 %1702, %v1920_v0   ;;  %49 = vperm.xlu0 %1701, %v1925_v1   ;;  %vm2617_vm2 = vcmp.ne.s32.totalorder %v1925_v1, 0  ;;  %v1959_v7 = vld [vmem:[%s2593_s0 + $0x20] sm:$0xff]  ;;  %v1974_v9 = vld [vmem:[%s2593_s0 + $0x38] sm:$0xff] }
   0x3   :  { %vm1946_vm3 = vmpackc.low %vm2614_vm1, %vm2618_vm0  ;;  %vm2611_vm4 = vcmp.ne.s32.totalorder %v1937_v4, 0  ;;  %v1954_v6 = vld [vmem:[%s2593_s0 + $0x28] sm:$0xff]  ;;  %vm2605_vm7 = vcmp.ne.s32.totalorder %v1959_v7, 0  ;;  %v1979_v10 = vld [vmem:[%s2593_s0 + $0x30] sm:$0xff]  ;;  %vm2602_vm9 = vcmp.ne.s32.totalorder %v1974_v9, 0 }
   0x4   :  { %vm1965_vm5 = vmpackc.low %vm2611_vm4, %vm2617_vm2  ;;  %vm2608_vm6 = vcmp.ne.s32.totalorder %v1954_v6, 0  ;;  %vm2599_vm10 = vcmp.ne.s32.totalorder %v1979_v10, 0  ;;  %v1994_v12 = vld [vmem:[%s2593_s0 + $0x48] sm:$0xff]  ;;  %v1999_v13 = vld [vmem:[%s2593_s0 + $0x40] sm:$0xff] }
   0x5   :  { %vm1985_vm8 = vmpackc.low %vm2608_vm6, %vm2605_vm7  ;;  %vm2601_vm12 = vcmp.ne.s32.totalorder %v1994_v12, 0  ;;  %vm2600_vm13 = vcmp.ne.s32.totalorder %v1999_v13, 0  ;;  %v2014_v15 = vld [vmem:[%s2593_s0 + $0x58] sm:$0xff]  ;;  %v2019_v16 = vld [vmem:[%s2593_s0 + $0x50] sm:$0xff] }
   0x6   :  { %vm2005_vm11 = vmpackc.low %vm2602_vm9, %vm2599_vm10  ;;  %58 = vperm.xlu1 %1702, %v1930_v2   ;;  %52 = vperm.xlu0 %1701, %v1937_v4   ;;  %vm2604_vm15 = vcmp.ne.s32.totalorder %v2014_v15, 0  ;;  %vm2603_vm10 = vcmp.ne.s32.totalorder %v2019_v16, 0  ;;  %v2036_v18 = vld [vmem:[%s2593_s0 + $0x68] sm:$0xff]  ;;  %v2041_v19 = vld [vmem:[%s2593_s0 + $0x60] sm:$0xff] }
   0x7   :  { %vm2027_vm14 = vmpackc.low %vm2601_vm12, %vm2600_vm13  ;;  %vm2607_vm12 = vcmp.ne.s32.totalorder %v2036_v18, 0  ;;  %vm2606_vm9 = vcmp.ne.s32.totalorder %v2041_v19, 0  ;;  %v2056_v21 = vld [vmem:[%s2593_s0 + $0x78] sm:$0xff]  ;;  %v2061_v22 = vld [vmem:[%s2593_s0 + $0x70] sm:$0xff] }
   0x8   :  { %vm2047_vm13 = vmpackc.low %vm2604_vm15, %vm2603_vm10  ;;  %vm2610_vm15 = vcmp.ne.s32.totalorder %v2056_v21, 0  ;;  %vm2609_vm7 = vcmp.ne.s32.totalorder %v2061_v22, 0  ;;  %v2076_v24 = vld [vmem:[%s2593_s0 + $0x88] sm:$0xff]  ;;  %v2081_v25 = vld [vmem:[%s2593_s0 + $0x80] sm:$0xff] }
   0x9   :  { %vm2067_vm10 = vmpackc.low %vm2607_vm12, %vm2606_vm9  ;;  %vm2613_vm12 = vcmp.ne.s32.totalorder %v2076_v24, 0  ;;  %vm2612_vm6 = vcmp.ne.s32.totalorder %v2081_v25, 0  ;;  %v2096_v27 = vld [vmem:[%s2593_s0 + $0x98] sm:$0xff]  ;;  %v2101_v28 = vld [vmem:[%s2593_s0 + $0x90] sm:$0xff] }
   0xa   :  { %vm2087_vm9 = vmpackc.low %vm2610_vm15, %vm2609_vm7  ;;  %64 = vperm.xlu1 %1702, %v1954_v6   ;;  %61 = vperm.xlu0 %1701, %v1959_v7   ;;  %vm2616_vm15 = vcmp.ne.s32.totalorder %v2096_v27, 0  ;;  %vm2615_vm4 = vcmp.ne.s32.totalorder %v2101_v28, 0  ;;  %v2118_v30 = vld [vmem:[%s2593_s0 + $0xa8] sm:$0xff]  ;;  %v2123_v31 = vld [vmem:[%s2593_s0 + $0xa0] sm:$0xff] }
   0xb   :  { %vm2109_vm7 = vmpackc.low %vm2613_vm12, %vm2612_vm6  ;;  %vm2622_vm12 = vcmp.ne.s32.totalorder %v2118_v30, 0  ;;  %vm2621_vm1 = vcmp.ne.s32.totalorder %v2123_v31, 0  ;;  %v2138_v33 = vld [vmem:[%s2593_s0 + $0xb8] sm:$0xff]  ;;  %v2143_v34 = vld [vmem:[%s2593_s0 + $0xb0] sm:$0xff] }
   0xc   :  { %vm2129_vm6 = vmpackc.low %vm2616_vm15, %vm2615_vm4  ;;  %vm2620_vm15 = vcmp.ne.s32.totalorder %v2138_v33, 0  ;;  %vm2619_vm2 = vcmp.ne.s32.totalorder %v2143_v34, 0  ;;  %v192_v37 = vld [vmem:[%s2594_s1] sm:$0xff]  ;;  %v193_v38 = vld [vmem:[%s2594_s1 + $0x8] sm:$0xff] }
   0xd   :  { %vm2149_vm4 = vmpackc.low %vm2622_vm12, %vm2621_vm1  ;;  %v194_v39 = vld [vmem:[%s2594_s1 + $0x10] sm:$0xff]  ;;  %v195_v40 = vld [vmem:[%s2594_s1 + $0x18] sm:$0xff] }
   0xe   :  { %v2644_v35 = vsel %vm2149_vm4, 4294967295, %v2643_v35  ;;  %vm2159_vm0 = vmpackc.low %vm2620_vm15, %vm2619_vm2  ;;  %70 = vperm.xlu1 %1702, %v1974_v9   ;;  %67 = vperm.xlu0 %1701, %v1979_v10  }
   0xf   :  { %v2646_v36 = vsel %vm2159_vm0, 4294967295, %v2645_v36 }
  0x10   :  { %12 = vsyncpa [#allocation5], 0  ;;  %v1603_v41 = vpack.c.bf16 %v193_v38, %v192_v37  ;;  %v1607_v42 = vpack.c.bf16 %v195_v40, %v194_v39  ;;  %v196_v43 = vld [vmem:[%s2594_s1 + $0x20] sm:$0xff]  ;;  %v197_v44 = vld [vmem:[%s2594_s1 + $0x28] sm:$0xff]  ;;  %v1878_v49 = vmov 0.0   ;;  %vm2647_vm2 = vcmp.ne.s32.totalorder %v1920_v0, 0 }
  0x11   :  { %v1611_v45 = vpack.c.bf16 %v197_v44, %v196_v43  ;;  %v198_v46 = vld [vmem:[%s2594_s1 + $0x30] sm:$0xff]  ;;  %v199_v47 = vld [vmem:[%s2594_s1 + $0x38] sm:$0xff]  ;;  %v1381_v50 = vsel %vm2647_vm2, 1.0, %v1878_v49  ;;  %vm2648_vm15 = vcmp.ne.s32.totalorder %v1925_v1, 0  ;;  %vm2649_vm1 = vcmp.ne.s32.totalorder %v1930_v2, 0  ;;  %v474_v40 = vld [vmem:[%s2595_s2 + $0x20] sm:$0xff] }
  0x12   :  { %76 = vperm.xlu1 %1702, %v1994_v12   ;;  %73 = vperm.xlu0 %1701, %v1999_v13   ;;  %v1615_v48 = vpack.c.bf16 %v199_v47, %v198_v46  ;;  %v1379_v51 = vsel %vm2648_vm15, 1.0, %v1878_v49  ;;  %v1382_v52 = vsel %vm2649_vm1, 1.0, %v1878_v49  ;;  %vm2650_vm12 = vcmp.ne.s32.totalorder %v1937_v4, 0  ;;  %v473_v38 = vld [vmem:[%s2595_s2 + $0x18] sm:$0xff]  ;;  %v476_v43 = vld [vmem:[%s2595_s2 + $0x30] sm:$0xff]  ;;  %v478_v46 = vld [vmem:[%s2595_s2 + $0x40] sm:$0xff] }
  0x13   :  { %1604 = vmatprep.subr.bf16.mxu0 %v1603_v41  ;;  %v1380_v53 = vsel %vm2650_vm12, 1.0, %v1878_v49  ;;  %v1708_v54 = vpack.i.bf16 %v1382_v52, %v1381_v50  ;;  %vm2651_vm2 = vcmp.ne.s32.totalorder %v1954_v6, 0  ;;  %vm2652_vm15 = vcmp.ne.s32.totalorder %v1959_v7, 0  ;;  %v477_v44 = vld [vmem:[%s2595_s2 + $0x38] sm:$0xff]  ;;  %v479_v47 = vld [vmem:[%s2595_s2 + $0x48] sm:$0xff]  ;;  %v480_v50 = vld [vmem:[%s2595_s2 + $0x50] sm:$0xff] }
  0x14   :  { %1606 = vmatpush3.bf16.msra.mxu0 %v1603_v41  ;;  %v1703_v55 = vpack.i.bf16 %v1380_v53, %v1379_v51  ;;  %v1384_v56 = vsel %vm2651_vm2, 1.0, %v1878_v49  ;;  %v1383_v57 = vsel %vm2652_vm15, 1.0, %v1878_v49  ;;  %vm2653_vm1 = vcmp.ne.s32.totalorder %v1974_v9, 0  ;;  %v475_v41 = vld [vmem:[%s2595_s2 + $0x28] sm:$0xff]  ;;  %v481_v51 = vld [vmem:[%s2595_s2 + $0x58] sm:$0xff] }
  0x15   :  { %1608 = vmatprep.subr.bf16.mxu0 %v1607_v42  ;;  %v1386_v58 = vsel %vm2653_vm1, 1.0, %v1878_v49  ;;  %vm2654_vm12 = vcmp.ne.s32.totalorder %v1979_v10, 0  ;;  %v1713_v61 = vpack.i.bf16 %v1384_v56, %v1383_v57  ;;  %vm2655_vm0 = vcmp.ne.s32.totalorder %v1994_v12, 0 }
  0x16   :  { %82 = vperm.xlu1 %1702, %v2014_v15   ;;  %79 = vperm.xlu0 %1701, %v2019_v16   ;;  %v1385_v59 = vsel %vm2654_vm12, 1.0, %v1878_v49  ;;  %v1388_v62 = vsel %vm2655_vm0, 1.0, %v1878_v49  ;;  %vm2656_vm2 = vcmp.ne.s32.totalorder %v1999_v13, 0  ;;  %vm2657_vm15 = vcmp.ne.s32.totalorder %v2014_v15, 0 }
  0x17   :  { %v1718_v60 = vpack.i.bf16 %v1386_v58, %v1385_v59  ;;  %v1387_v63 = vsel %vm2656_vm2, 1.0, %v1878_v49  ;;  %v1390_v0 = vsel %vm2657_vm15, 1.0, %v1878_v49  ;;  %vm2658_vm1 = vcmp.ne.s32.totalorder %v2019_v16, 0 }
  0x18   :  { %1610 = vmatpush3.bf16.msra.mxu0 %v1607_v42  ;;  %v1389_v1 = vsel %vm2658_vm1, 1.0, %v1878_v49  ;;  %v1723_v3 = vpack.i.bf16 %v1388_v62, %v1387_v63  ;;  %vm2659_vm12 = vcmp.ne.s32.totalorder %v2036_v18, 0  ;;  %vm2660_vm0 = vcmp.ne.s32.totalorder %v2041_v19, 0 }
  0x19   :  { %1612 = vmatprep.subr.bf16.mxu0 %v1611_v45  ;;  %v1728_v2 = vpack.i.bf16 %v1390_v0, %v1389_v1  ;;  %v1392_v4 = vsel %vm2659_vm12, 1.0, %v1878_v49  ;;  %v1391_v6 = vsel %vm2660_vm0, 1.0, %v1878_v49  ;;  %vm2661_vm2 = vcmp.ne.s32.totalorder %v2056_v21, 0 }
  0x1a   :  { %88 = vperm.xlu1 %1702, %v2036_v18   ;;  %85 = vperm.xlu0 %1701, %v2041_v19   ;;  %v1394_v7 = vsel %vm2661_vm2, 1.0, %v1878_v49  ;;  %vm2662_vm15 = vcmp.ne.s32.totalorder %v2061_v22, 0  ;;  %v1733_v12 = vpack.i.bf16 %v1392_v4, %v1391_v6  ;;  %vm2663_vm1 = vcmp.ne.s32.totalorder %v2076_v24, 0 }
  0x1b   :  { %v1393_v9 = vsel %vm2662_vm15, 1.0, %v1878_v49  ;;  %v1396_v13 = vsel %vm2663_vm1, 1.0, %v1878_v49  ;;  %vm2664_vm12 = vcmp.ne.s32.totalorder %v2081_v25, 0  ;;  %vm2665_vm0 = vcmp.ne.s32.totalorder %v2096_v27, 0 }
  0x1c   :  { %1614 = vmatpush3.bf16.msra.mxu0 %v1611_v45  ;;  %v1738_v10 = vpack.i.bf16 %v1394_v7, %v1393_v9  ;;  %v1395_v15 = vsel %vm2664_vm12, 1.0, %v1878_v49  ;;  %v1398_v16 = vsel %vm2665_vm0, 1.0, %v1878_v49  ;;  %vm2666_vm2 = vcmp.ne.s32.totalorder %v2101_v28, 0 }
  0x1d   :  { %1616 = vmatprep.subr.bf16.mxu0 %v1615_v48  ;;  %v1397_v18 = vsel %vm2666_vm2, 1.0, %v1878_v49  ;;  %vm2667_vm15 = vcmp.ne.s32.totalorder %v2118_v30, 0  ;;  %vm2668_vm1 = vcmp.ne.s32.totalorder %v2123_v31, 0  ;;  %vm2669_vm12 = vcmp.ne.s32.totalorder %v2138_v33, 0 }
  0x1e   :  { %94 = vperm.xlu1 %1702, %v2056_v21   ;;  %91 = vperm.xlu0 %1701, %v2061_v22   ;;  %v1748_v19 = vpack.i.bf16 %v1398_v16, %v1397_v18  ;;  %v1743_v21 = vpack.i.bf16 %v1396_v13, %v1395_v15  ;;  %v1400_v22 = vsel %vm2667_vm15, 1.0, %v1878_v49  ;;  %vm2670_vm0 = vcmp.ne.s32.totalorder %v2143_v34, 0 }
  0x1f   :  { %v488_v42 = vpack.c.bf16 %v475_v41, %v474_v40  ;;  %v489_v45 = vpack.c.bf16 %v477_v44, %v476_v43  ;;  %v491_v52 = vpack.c.bf16 %v481_v51, %v480_v50  ;;  %v46_v53 = vlaneseq }
  0x20   :  { %1618 = vmatpush3.bf16.msra.mxu0 %v1615_v48  ;;  %v490_v48 = vpack.c.bf16 %v479_v47, %v478_v46  ;;  %vm200_vm2 = vcmask 523264  }
  0x22   :  { %100 = vperm.xlu1 %1702, %v2076_v24   ;;  %97 = vperm.xlu0 %1701, %v2081_v25   ;;  %v1399_v24 = vsel %vm2668_vm1, 1.0, %v1878_v49  ;;  %v1402_v25 = vsel %vm2669_vm12, 1.0, %v1878_v49 }
  0x23   :  { %v1753_v37 = vpack.i.bf16 %v1400_v22, %v1399_v24 }
  0x26   :  { %106 = vperm.xlu1 %1702, %v2096_v27   ;;  %103 = vperm.xlu0 %1701, %v2101_v28   ;;  %v1401_v27 = vsel %vm2670_vm0, 1.0, %v1878_v49 }
  0x27   :  { %v1758_v28 = vpack.i.bf16 %v1402_v25, %v1401_v27 }
  0x2a   :  { %112 = vperm.xlu1 %1702, %v2118_v30   ;;  %109 = vperm.xlu0 %1701, %v2123_v31   ;;  %v470_v30 = vld [vmem:[%s2595_s2] sm:$0xff]  ;;  %v471_v31 = vld [vmem:[%s2595_s2 + $0x8] sm:$0xff] }
  0x2e   :  { %118 = vperm.xlu1 %1702, %v2138_v33   ;;  %115 = vperm.xlu0 %1701, %v2143_v34   ;;  %v472_v33 = vld [vmem:[%s2595_s2 + $0x10] sm:$0xff]  ;;  %v486_v34 = vpack.c.bf16 %v471_v31, %v470_v30 }
  0x2f   :  { %v487_v39 = vpack.c.bf16 %v473_v38, %v472_v33 }
  0x30   :  { %1553 = vmatprep.subr.bf16.mxu1 %v486_v34 }
  0x31   :  { %1554 = vmatpush3.bf16.msra.mxu1 %v486_v34 }
  0x32   :  { %1709 = vperm.xlu1 %1702, %v1708_v54   ;;  %1704 = vperm.xlu0 %1701, %v1703_v55   ;;  %v2314_v54 = vand.u32 127, %v46_v53 }
  0x33   :  { %1555 = vmatprep.subr.bf16.mxu1 %v487_v39 }
  0x35   :  { %1556 = vmatpush3.bf16.msra.mxu1 %v487_v39 }
  0x36   :  { %1719 = vperm.xlu1 %1702, %v1718_v60   ;;  %1714 = vperm.xlu0 %1701, %v1713_v61  }
  0x37   :  { %1557 = vmatprep.subr.bf16.mxu1 %v488_v42 }
  0x39   :  { %1558 = vmatpush3.bf16.msra.mxu1 %v488_v42 }
  0x3a   :  { %1729 = vperm.xlu1 %1702, %v1728_v2   ;;  %1724 = vperm.xlu0 %1701, %v1723_v3  }
  0x3b   :  { %1559 = vmatprep.subr.bf16.mxu1 %v489_v45 }
  0x3d   :  { %1560 = vmatpush3.bf16.msra.mxu1 %v489_v45 }
  0x3e   :  { %1739 = vperm.xlu1 %1702, %v1738_v10   ;;  %1734 = vperm.xlu0 %1701, %v1733_v12  }
  0x3f   :  { %1561 = vmatprep.subr.bf16.mxu1 %v490_v48 }
  0x41   :  { %1562 = vmatpush3.bf16.msra.mxu1 %v490_v48 }
  0x42   :  { %1749 = vperm.xlu1 %1702, %v1748_v19   ;;  %1744 = vperm.xlu0 %1701, %v1743_v21  }
  0x43   :  { %1563 = vmatprep.subr.bf16.mxu1 %v491_v52 }
  0x45   :  { %1564 = vmatpush3.bf16.msra.mxu1 %v491_v52  ;;  %v482_v52 = vld [vmem:[%s2595_s2 + $0x60] sm:$0xff] }
  0x46   :  { %1759 = vperm.xlu1 %1702, %v1758_v28   ;;  %1754 = vperm.xlu0 %1701, %v1753_v37  }
  0x81   :  { %v56_v55 = vpop.permute.xlu1 %55  ;;  %v50_v56 = vpop.permute.xlu0 %49 }
  0x82   :  { %vm120_vm15 = vcmp.eq.s32.totalorder %v50_v56, %v2314_v54  ;;  %vm122_vm1 = vcmp.eq.s32.totalorder %v56_v55, %v2314_v54  ;;  %v483_v55 = vld [vmem:[%s2595_s2 + $0x68] sm:$0xff] }
  0x83   :  { %v1330_v57 = vsel %vm120_vm15, 1.0, %v1878_v49  ;;  %v1332_v60 = vsel %vm122_vm1, 1.0, %v1878_v49  ;;  %v492_v56 = vpack.c.bf16 %v483_v55, %v482_v52  ;;  %v2509_v55 = vld [vmem:[%s2596_s3] ss:$0 sm:$0xff]  ;;  %s1883_s3 = smov [#allocation2]  }
  0x84   :  { %1517 = vmatprep.mubr.msk.f32.mxu0 %vm200_vm2, %v1330_v57  ;;  %v484_v57 = vld [vmem:[%s2595_s2 + $0x70] sm:$0xff]  ;;  %s1305_s11 = sshll.u32 %s1883_s3, 4  ;;  %s1306_s11 = int_to_ptr.vmem [resolvable:$true] %s1305_s11 }
  0x85   :  { %v59_v58 = vpop.permute.xlu1 %58  ;;  %v53_v59 = vpop.permute.xlu0 %52  ;;  %1565 = vmatprep.subr.bf16.mxu1 %v492_v56  ;;  %s1829_s12 = scalar_lea.vmem %s1306_s11, 384  ;;  %p1834_p1 = scmp.lt.s32.totalorder %s1306_s11, %s1306_s11 }
  0x86   :  { %vm121_vm12 = vcmp.eq.s32.totalorder %v53_v59, %v2314_v54  ;;  %vm123_vm0 = vcmp.eq.s32.totalorder %v59_v58, %v2314_v54  ;;  %1566 = vmatpush3.bf16.msra.mxu1 %v492_v56  ;;  %v485_v58 = vld [vmem:[%s2595_s2 + $0x78] sm:$0xff]  ;;  %p1830_p0 = scmp.ne.s32.totalorder %s1306_s11, %s1829_s12  ;;  %p1835_p2 = scmp.lt.s32.totalorder %s1829_s12, %s1829_s12 }
  0x87   :  { %v1331_v61 = vsel %vm121_vm12, 1.0, %v1878_v49  ;;  %v1333_v0 = vsel %vm123_vm0, 1.0, %v1878_v49  ;;  %v493_v59 = vpack.c.bf16 %v485_v58, %v484_v57 }
  0x88   :  { %1518 = vmatmul.mubr.msk.f32.vlgmr.msra.gmra.mrb[0].mxu0 %vm200_vm2, %v1331_v61  ;;  %v2403_v61 = vshrl.u32 %v46_v53, 7  ;;  %p1836_p3 = por %p1835_p2, %p1834_p1 }
  0x89   :  { %v65_v62 = vpop.permute.xlu1 %64  ;;  %1520 = vmatprep.mubr.msk.f32.mxu0 %vm200_vm2, %v1332_v60  ;;  %v62_v63 = vpop.permute.xlu0 %61  ;;  %1567 = vmatprep.subr.bf16.mxu1 %v493_v59  ;;  %v1879_v60 = vmov 0.0|0.0  }
  0x8a   :  { %vm124_vm15 = vcmp.eq.s32.totalorder %v62_v63, %v2314_v54  ;;  %vm125_vm1 = vcmp.eq.s32.totalorder %v65_v62, %v2314_v54  ;;  %1568 = vmatpush3.bf16.msra.mxu1 %v493_v59  ;;  %1619 = vmatprep.subr.bf16.mxu0 %v1879_v60  ;;  %v2406_v62 = vadd.s32 128, %v2314_v54  ;;  %v875_v63 = vmul.u32 8, %v2403_v61  ;;  %p1837_p4 = pnand %p1836_p3, %p1830_p0 }
  0x8b   :  { %v1334_v1 = vsel %vm124_vm15, 1.0, %v1878_v49  ;;  %v1335_v4 = vsel %vm125_vm1, 1.0, %v1878_v49  ;;  %1655 = vmatprep.subr.bf16.mxu1 %v1879_v60  ;;  %v874_v23 = vadd.s32 16, %v2403_v61 }
  0x8c   :  { %1521 = vmatmul.mubr.msk.f32.gmra.mrb[2].mxu0 %vm200_vm2, %v1333_v0  ;;  %v879_v0 = vsub.s32 %v2406_v62, %v875_v63  ;;  %v878_v29 = vsub.s32 %v2314_v54, %v875_v63 }
  0x8d   :  { %v71_v2 = vpop.permute.xlu1 %70  ;;  %1523 = vmatprep.mubr.msk.f32.mxu0 %vm200_vm2, %v1334_v1  ;;  %v68_v3 = vpop.permute.xlu0 %67 }
  0x8e   :  { %vm126_vm12 = vcmp.eq.s32.totalorder %v68_v3, %v2314_v54  ;;  %vm127_vm4 = vcmp.eq.s32.totalorder %v71_v2, %v2314_v54 }
  0x8f   :  { %v1336_v6 = vsel %vm126_vm12, 1.0, %v1878_v49  ;;  %v1337_v10 = vsel %vm127_vm4, 1.0, %v1878_v49 }
  0x90   :  { %1524 = vmatmul.mubr.msk.f32.gmra.mrb[4].mxu0 %vm200_vm2, %v1335_v4 }
  0x91   :  { %v77_v7 = vpop.permute.xlu1 %76  ;;  %1526 = vmatprep.mubr.msk.f32.mxu0 %vm200_vm2, %v1336_v6  ;;  %v74_v9 = vpop.permute.xlu0 %73 }
  0x92   :  { %vm128_vm0 = vcmp.eq.s32.totalorder %v74_v9, %v2314_v54  ;;  %vm129_vm15 = vcmp.eq.s32.totalorder %v77_v7, %v2314_v54 }
  0x93   :  { %v1338_v12 = vsel %vm128_vm0, 1.0, %v1878_v49  ;;  %v1339_v16 = vsel %vm129_vm15, 1.0, %v1878_v49 }
  0x94   :  { %1527 = vmatmul.mubr.msk.f32.gmra.mrb[6].mxu0 %vm200_vm2, %v1337_v10 }
  0x95   :  { %v83_v13 = vpop.permute.xlu1 %82  ;;  %1529 = vmatprep.mubr.msk.f32.mxu0 %vm200_vm2, %v1338_v12  ;;  %v80_v15 = vpop.permute.xlu0 %79  ;;  %v1880_v12 = vmov 1.0|1.0  }
  0x96   :  { %vm130_vm1 = vcmp.eq.s32.totalorder %v80_v15, %v2314_v54  ;;  %vm131_vm12 = vcmp.eq.s32.totalorder %v83_v13, %v2314_v54 }
  0x97   :  { %v1340_v18 = vsel %vm130_vm1, 1.0, %v1878_v49  ;;  %v1341_v22 = vsel %vm131_vm12, 1.0, %v1878_v49 }
  0x98   :  { %1530 = vmatmul.mubr.msk.f32.gmra.mrb[8].mxu0 %vm200_vm2, %v1339_v16 }
  0x99   :  { %v89_v19 = vpop.permute.xlu1 %88  ;;  %1532 = vmatprep.mubr.msk.f32.mxu0 %vm200_vm2, %v1340_v18  ;;  %v86_v21 = vpop.permute.xlu0 %85 }
  0x9a   :  { %vm132_vm4 = vcmp.eq.s32.totalorder %v86_v21, %v2314_v54  ;;  %vm133_vm0 = vcmp.eq.s32.totalorder %v89_v19, %v2314_v54 }
  0x9b   :  { %v1342_v24 = vsel %vm132_vm4, 1.0, %v1878_v49  ;;  %v1343_v28 = vsel %vm133_vm0, 1.0, %v1878_v49 }
  0x9c   :  { %1533 = vmatmul.mubr.msk.f32.gmra.mrb[10].mxu0 %vm200_vm2, %v1341_v22 }
  0x9d   :  { %v95_v25 = vpop.permute.xlu1 %94  ;;  %1535 = vmatprep.mubr.msk.f32.mxu0 %vm200_vm2, %v1342_v24  ;;  %v92_v27 = vpop.permute.xlu0 %91 }
  0x9e   :  { %vm134_vm15 = vcmp.eq.s32.totalorder %v92_v27, %v2314_v54  ;;  %vm135_vm1 = vcmp.eq.s32.totalorder %v95_v25, %v2314_v54 }
  0x9f   :  { %v1344_v37 = vsel %vm134_vm15, 1.0, %v1878_v49  ;;  %v1345_v33 = vsel %vm135_vm1, 1.0, %v1878_v49 }
  0xa0   :  { %1536 = vmatmul.mubr.msk.f32.gmra.mrb[12].mxu0 %vm200_vm2, %v1343_v28 }
  0xa1   :  { %v101_v30 = vpop.permute.xlu1 %100  ;;  %1538 = vmatprep.mubr.msk.f32.mxu0 %vm200_vm2, %v1344_v37  ;;  %v98_v31 = vpop.permute.xlu0 %97 }
  0xa2   :  { %vm136_vm12 = vcmp.eq.s32.totalorder %v98_v31, %v2314_v54  ;;  %vm137_vm4 = vcmp.eq.s32.totalorder %v101_v30, %v2314_v54 }
  0xa3   :  { %v1346_v34 = vsel %vm136_vm12, 1.0, %v1878_v49  ;;  %v1347_v40 = vsel %vm137_vm4, 1.0, %v1878_v49 }
  0xa4   :  { %1539 = vmatmul.mubr.msk.f32.gmra.mrb[14].mxu0 %vm200_vm2, %v1345_v33 }
  0xa5   :  { %v107_v38 = vpop.permute.xlu1 %106  ;;  %1541 = vmatprep.mubr.msk.f32.mxu0 %vm200_vm2, %v1346_v34  ;;  %v104_v39 = vpop.permute.xlu0 %103  ;;  %v873_v34 = vadd.s32 8, %v2403_v61 }
  0xa6   :  { %vm138_vm0 = vcmp.eq.s32.totalorder %v104_v39, %v2314_v54  ;;  %vm139_vm15 = vcmp.eq.s32.totalorder %v107_v38, %v2314_v54 }
  0xa7   :  { %v1348_v41 = vsel %vm138_vm0, 1.0, %v1878_v49  ;;  %v1349_v44 = vsel %vm139_vm15, 1.0, %v1878_v49  ;;  %vm885_vm15 = vcmp.ge.s32.totalorder %v879_v0, 0 }
  0xa8   :  { %1542 = vmatmul.mubr.msk.f32.gmra.mrb[16].mxu0 %vm200_vm2, %v1347_v40  ;;  %v876_v40 = vmul.u32 8, %v873_v34 }
  0xa9   :  { %v113_v42 = vpop.permute.xlu1 %112  ;;  %1544 = vmatprep.mubr.msk.f32.mxu0 %vm200_vm2, %v1348_v41  ;;  %v110_v43 = vpop.permute.xlu0 %109 }
  0xaa   :  { %vm140_vm1 = vcmp.eq.s32.totalorder %v110_v43, %v2314_v54  ;;  %vm141_vm12 = vcmp.eq.s32.totalorder %v113_v42, %v2314_v54  ;;  %v881_v26 = vsub.s32 %v2406_v62, %v876_v40  ;;  %v880_v32 = vsub.s32 %v2314_v54, %v876_v40 }
  0xab   :  { %v1350_v45 = vsel %vm140_vm1, 1.0, %v1878_v49  ;;  %v1351_v48 = vsel %vm141_vm12, 1.0, %v1878_v49  ;;  %vm891_vm1 = vcmp.lt.s32.totalorder %v879_v0, 8 }
  0xac   :  { %1545 = vmatmul.mubr.msk.f32.gmra.mrb[18].mxu0 %vm200_vm2, %v1349_v44  ;;  %vm897_vm12 = vmand %vm885_vm15, %vm891_vm1  ;;  %v877_v44 = vmul.u32 8, %v874_v23 }
  0xad   :  { %v119_v46 = vpop.permute.xlu1 %118  ;;  %1547 = vmatprep.mubr.msk.f32.mxu0 %vm200_vm2, %v1350_v45  ;;  %v116_v47 = vpop.permute.xlu0 %115  ;;  %v2413_v1 = vsel %vm897_vm12, 1.0, %v1878_v49 }
  0xae   :  { %vm142_vm4 = vcmp.eq.s32.totalorder %v116_v47, %v2314_v54  ;;  %vm143_vm0 = vcmp.eq.s32.totalorder %v119_v46, %v2314_v54  ;;  %v883_v47 = vsub.s32 %v2406_v62, %v877_v44 }
  0xaf   :  { %v1352_v50 = vsel %vm142_vm4, 1.0, %v1878_v49  ;;  %v1353_v51 = vsel %vm143_vm0, 1.0, %v1878_v49  ;;  %vm886_vm4 = vcmp.ge.s32.totalorder %v880_v32, 0  ;;  %vm892_vm0 = vcmp.lt.s32.totalorder %v880_v32, 8 }
  0xb0   :  { %1548 = vmatmul.mubr.msk.f32.gmra.mrb[20].mxu0 %vm200_vm2, %v1351_v48  ;;  %vm2487_vm1 = vmand %vm886_vm4, %vm892_vm0 }
  0xb1   :  { %1550 = vmatprep.mubr.msk.f32.mxu0 %vm200_vm2, %v1352_v50  ;;  %v882_v50 = vsub.s32 %v2314_v54, %v877_v44 }
  0xb3   :  { %vm888_vm12 = vcmp.ge.s32.totalorder %v882_v50, 0 }
  0xb4   :  { %1551 = vmatmul.mubr.msk.f32.gmra.mrb[22].mxu0 %vm200_vm2, %v1353_v51  ;;  %v1881_v51 = vmov 1.0  }
  0xb5   :  { %1409 = vmatprep.mubr.msk.f32.mxu0 %vm200_vm2, %v2413_v1 }
 0x15b   :  { %v1519_v53 = vpop.f32.mrb[0].mxu0 }
 0x15c   :  { %v339_v2 = vpop.f32.mrb[1].mxu0 }
 0x15d   :  { %v458_v3 = vpack.c.bf16 %v1519_v53, %v339_v2 }
 0x15f   :  { %v1522_v4 = vpop.f32.mrb[2].mxu0  ;;  %1569 = vmatprep.mubr.bf16.mxu1 %v458_v3 }
 0x160   :  { %v349_v6 = vpop.f32.mrb[3].mxu0 }
 0x161   :  { %v459_v7 = vpack.c.bf16 %v1522_v4, %v349_v6 }
 0x163   :  { %v1525_v9 = vpop.f32.mrb[4].mxu0  ;;  %1570 = vmatmul.mubr.bf16.vlgmr.msra.gmra.mrb[0].mxu1 %v459_v7  ;;  %v1710_v7 = vpop.permute.xlu1 %1709 }
 0x164   :  { %v359_v10 = vpop.f32.mrb[5].mxu0  ;;  %1657 = vmatpush1.bf16.msk.msra.mxu1 %vm1965_vm5, %v1880_v12  ;;  %vm893_vm5 = vcmp.lt.s32.totalorder %v881_v26, 8 }
 0x165   :  { %v460_v13 = vpack.c.bf16 %v1525_v9, %v359_v10  ;;  %1658 = vmatprep.subr.bf16.mxu1 %v1879_v60 }
 0x167   :  { %v1528_v15 = vpop.f32.mrb[6].mxu0  ;;  %1573 = vmatprep.mubr.bf16.mxu1 %v460_v13 }
 0x168   :  { %v369_v16 = vpop.f32.mrb[7].mxu0  ;;  %1660 = vmatpush1.bf16.msk.msra.mxu1 %vm1946_vm3, %v1880_v12  ;;  %vm887_vm3 = vcmp.ge.s32.totalorder %v881_v26, 0 }
 0x169   :  { %v461_v18 = vpack.c.bf16 %v1528_v15, %v369_v16  ;;  %1661 = vmatprep.subr.bf16.mxu1 %v1879_v60 }
 0x16b   :  { %v1531_v19 = vpop.f32.mrb[8].mxu0  ;;  %1574 = vmatmul.mubr.bf16.gmra.mrb[4].mxu1 %v461_v18  ;;  %v1712_v18 = vunpack.i.h.bf16 %v1710_v7 }
 0x16c   :  { %v379_v21 = vpop.f32.mrb[9].mxu0  ;;  %1663 = vmatpush1.bf16.msk.msra.mxu1 %vm1985_vm8, %v1880_v12  ;;  %vm890_vm8 = vcmp.lt.s32.totalorder %v878_v29, 8 }
 0x16d   :  { %v462_v8 = vpack.c.bf16 %v1531_v19, %v379_v21  ;;  %1664 = vmatprep.subr.bf16.mxu1 %v1879_v60  ;;  %v1711_v19 = vunpack.i.l.bf16 %v1710_v7 }
 0x16f   :  { %v1534_v22 = vpop.f32.mrb[10].mxu0  ;;  %1577 = vmatprep.mubr.bf16.mxu1 %v462_v8 }
 0x170   :  { %v389_v24 = vpop.f32.mrb[11].mxu0  ;;  %1666 = vmatpush1.bf16.msk.msra.mxu1 %vm2005_vm11, %v1880_v12  ;;  %vm895_vm11 = vcmp.lt.s32.totalorder %v883_v47, 8 }
 0x171   :  { %v463_v5 = vpack.c.bf16 %v1534_v22, %v389_v24  ;;  %1667 = vmatprep.subr.bf16.mxu1 %v1879_v60 }
 0x173   :  { %v1537_v25 = vpop.f32.mrb[12].mxu0  ;;  %1578 = vmatmul.mubr.bf16.gmra.mrb[8].mxu1 %v463_v5 }
 0x174   :  { %v399_v27 = vpop.f32.mrb[13].mxu0  ;;  %1669 = vmatpush1.bf16.msk.msra.mxu1 %vm2027_vm14, %v1880_v12 }
 0x175   :  { %v464_v11 = vpack.c.bf16 %v1537_v25, %v399_v27  ;;  %1670 = vmatprep.subr.bf16.mxu1 %v1879_v60 }
 0x177   :  { %v1540_v28 = vpop.f32.mrb[14].mxu0  ;;  %1581 = vmatprep.mubr.bf16.mxu1 %v464_v11 }
 0x178   :  { %v409_v37 = vpop.f32.mrb[15].mxu0  ;;  %1672 = vmatpush1.bf16.msk.msra.mxu1 %vm2047_vm13, %v1880_v12  ;;  %vm2672_vm13 = vnez %v2646_v36 }
 0x179   :  { %v465_v14 = vpack.c.bf16 %v1540_v28, %v409_v37  ;;  %1673 = vmatprep.subr.bf16.mxu1 %v1879_v60 }
 0x17b   :  { %v1543_v30 = vpop.f32.mrb[16].mxu0  ;;  %1582 = vmatmul.mubr.bf16.gmra.mrb[12].mxu1 %v465_v14 }
 0x17c   :  { %v419_v31 = vpop.f32.mrb[17].mxu0  ;;  %1675 = vmatpush1.bf16.msk.msra.mxu1 %vm2067_vm10, %v1880_v12  ;;  %vm889_vm10 = vcmp.ge.s32.totalorder %v883_v47, 0 }
 0x17d   :  { %v466_v17 = vpack.c.bf16 %v1543_v30, %v419_v31  ;;  %1676 = vmatprep.subr.bf16.mxu1 %v1879_v60  ;;  %vm901_vm15 = vmand %vm889_vm10, %vm895_vm11 }
 0x17e   :  { %v2492_v52 = vsel %vm901_vm15, 1.0, %v1878_v49 }
 0x17f   :  { %v1546_v33 = vpop.f32.mrb[18].mxu0  ;;  %1585 = vmatprep.mubr.bf16.mxu1 %v466_v17 }
 0x180   :  { %v429_v38 = vpop.f32.mrb[19].mxu0  ;;  %1678 = vmatpush1.bf16.msk.msra.mxu1 %vm2087_vm9, %v1880_v12  ;;  %vm899_vm9 = vmand %vm887_vm3, %vm893_vm5  ;;  %vm894_vm3 = vcmp.lt.s32.totalorder %v882_v50, 8 }
 0x181   :  { %v467_v20 = vpack.c.bf16 %v1546_v33, %v429_v38  ;;  %1679 = vmatprep.subr.bf16.mxu1 %v1879_v60  ;;  %vm2499_vm5 = vmand %vm888_vm12, %vm894_vm3  ;;  %v1720_v33 = vpop.permute.xlu1 %1719 }
 0x183   :  { %v1549_v39 = vpop.f32.mrb[20].mxu0  ;;  %1586 = vmatmul.mubr.bf16.gmra.mrb[16].mxu1 %v467_v20 }
 0x184   :  { %v439_v41 = vpop.f32.mrb[21].mxu0  ;;  %1681 = vmatpush1.bf16.msk.msra.mxu1 %vm2109_vm7, %v1880_v12  ;;  %vm2671_vm7 = vnez %v2644_v35  ;;  %v2479_v35 = vsel %vm899_vm9, 1.0, %v1878_v49 }
 0x185   :  { %v468_v42 = vpack.c.bf16 %v1549_v39, %v439_v41  ;;  %1682 = vmatprep.subr.bf16.mxu1 %v1879_v60 }
 0x187   :  { %v1552_v43 = vpop.f32.mrb[22].mxu0  ;;  %1589 = vmatprep.mubr.bf16.mxu1 %v468_v42  ;;  %v1722_v42 = vunpack.i.h.bf16 %v1720_v33 }
 0x188   :  { %v449_v45 = vpop.f32.mrb[23].mxu0  ;;  %1684 = vmatpush1.bf16.msk.msra.mxu1 %vm2129_vm6, %v1880_v12  ;;  %vm884_vm6 = vcmp.ge.s32.totalorder %v878_v29, 0 }
 0x189   :  { %v469_v46 = vpack.c.bf16 %v1552_v43, %v449_v45  ;;  %1685 = vmatprep.subr.bf16.mxu1 %v1879_v60  ;;  %vm2474_vm14 = vmand %vm884_vm6, %vm890_vm8  ;;  %v1721_v43 = vunpack.i.l.bf16 %v1720_v33 }
 0x18b   :  { %1590 = vmatmul.mubr.bf16.gmra.mrb[20].mxu1 %v469_v46 }
 0x18c   :  { %1687 = vmatpush1.bf16.msk.msra.mxu1 %vm2671_vm7, %v1880_v12  ;;  %1439 = vmatprep.mubr.msk.f32.mxu1 %vm200_vm2, %v2413_v1  ;;  %vm1882_vm7 = vmmov 0  }
 0x18d   :  { %1688 = vmatprep.subr.bf16.mxu1 %v1879_v60 }
 0x190   :  { %1690 = vmatpush1.bf16.msk.msra.mxu1 %vm2672_vm13, %v1880_v12  ;;  %v1705_v12 = vpop.permute.xlu0 %1704 }
 0x191   :  { %v1707_v8 = vunpack.i.h.bf16 %v1705_v12  ;;  %v1706_v22 = vunpack.i.l.bf16 %v1705_v12 }
 0x193   :  { %1440 = vmatmul.mubr.msk.f32.vlgmr.msra.gmra.mrb[24].mxu1 %vm2474_vm14, %v1881_v51 }
 0x194   :  { %1441 = vmatprep.mubr.msk.f32.mxu1 %vm200_vm2, %v2479_v35  ;;  %v1715_v39 = vpop.permute.xlu0 %1714 }
 0x195   :  { %v1717_v44 = vunpack.i.h.bf16 %v1715_v39  ;;  %v1716_v45 = vunpack.i.l.bf16 %v1715_v39 }
 0x197   :  { %1442 = vmatmul.mubr.msk.f32.gmra.mrb[26].mxu1 %vm2487_vm1, %v1881_v51 }
 0x198   :  { %1443 = vmatprep.mubr.msk.f32.mxu1 %vm200_vm2, %v2492_v52 }
 0x19b   :  { %1444 = vmatmul.mubr.msk.f32.gmra.mrb[28].mxu1 %vm2499_vm5, %v1881_v51 }
 0x236   :  { %v1571_v56 = vpop.f32.mrb[0].mxu1 }
 0x237   :  { %v544_v57 = vadd.f32 %v1571_v56, %v2509_v55  ;;  %v535_v58 = vpop.f32.mrb[1].mxu1 }
 0x238   :  { %v536_v59 = vadd.f32 %v2509_v55, %v535_v58  ;;  %v1572_v62 = vpop.f32.mrb[2].mxu1 }
 0x239   :  { %1763 = vtanh.f32 %v544_v57  ;;  %v547_v63 = vadd.f32 %v1572_v62, %v2509_v55  ;;  %v538_v0 = vpop.f32.mrb[3].mxu1 }
 0x23a   :  { %1765 = vtanh.f32 %v536_v59  ;;  %v539_v1 = vadd.f32 %v2509_v55, %v538_v0  ;;  %v1730_v0 = vpop.permute.xlu1 %1729 }
 0x23b   :  { %1767 = vtanh.f32 %v547_v63 }
 0x23c   :  { %1769 = vtanh.f32 %v539_v1 }
 0x23e   :  { %v1575_v53 = vpop.f32.mrb[4].mxu1 }
 0x23f   :  { %v560_v2 = vadd.f32 %v1575_v53, %v2509_v55  ;;  %v551_v3 = vpop.f32.mrb[5].mxu1 }
 0x240   :  { %v552_v4 = vadd.f32 %v2509_v55, %v551_v3  ;;  %v1576_v6 = vpop.f32.mrb[6].mxu1  ;;  %v1725_v3 = vpop.permute.xlu0 %1724 }
 0x241   :  { %1771 = vtanh.f32 %v560_v2  ;;  %v563_v9 = vadd.f32 %v1576_v6, %v2509_v55  ;;  %v554_v10 = vpop.f32.mrb[7].mxu1 }
 0x242   :  { %1773 = vtanh.f32 %v552_v4  ;;  %v555_v13 = vadd.f32 %v2509_v55, %v554_v10  ;;  %v1731_v10 = vunpack.i.l.bf16 %v1730_v0 }
 0x243   :  { %v1764_v15 = vpop.eup %1763  ;;  %1775 = vtanh.f32 %v563_v9  ;;  %v1732_v9 = vunpack.i.h.bf16 %v1730_v0 }
 0x244   :  { %v1766_v16 = vpop.eup %1765  ;;  %1777 = vtanh.f32 %v555_v13  ;;  %v848_v25 = vmul.f32 %v1764_v15, %v1711_v19  ;;  %v1727_v13 = vunpack.i.h.bf16 %v1725_v3  ;;  %v1726_v15 = vunpack.i.l.bf16 %v1725_v3 }
 0x245   :  { %v1768_v21 = vpop.eup %1767  ;;  %v846_v37 = vmul.f32 %v1766_v16, %v1706_v22 }
 0x246   :  { %v1770_v24 = vpop.eup %1769  ;;  %v1579_v5 = vpop.f32.mrb[8].mxu1  ;;  %v849_v27 = vmul.f32 %v1768_v21, %v1712_v18 }
 0x247   :  { %v576_v11 = vadd.f32 %v1579_v5, %v2509_v55  ;;  %v567_v28 = vpop.f32.mrb[9].mxu1  ;;  %v847_v14 = vmul.f32 %v1770_v24, %v1707_v8 }
 0x248   :  { %v568_v30 = vadd.f32 %v2509_v55, %v567_v28  ;;  %v1580_v31 = vpop.f32.mrb[10].mxu1  ;;  %v1623_v17 = vpack.c.bf16 %v849_v27, %v848_v25  ;;  %v1740_v28 = vpop.permute.xlu1 %1739 }
 0x249   :  { %1779 = vtanh.f32 %v576_v11  ;;  %v579_v34 = vadd.f32 %v1580_v31, %v2509_v55  ;;  %v570_v38 = vpop.f32.mrb[11].mxu1  ;;  %v1620_v20 = vpack.c.bf16 %v847_v14, %v846_v37  ;;  %v1735_v31 = vpop.permute.xlu0 %1734 }
 0x24a   :  { %1781 = vtanh.f32 %v568_v30  ;;  %v571_v40 = vadd.f32 %v2509_v55, %v570_v38  ;;  %v1742_v38 = vunpack.i.h.bf16 %v1740_v28 }
 0x24b   :  { %v1772_v23 = vpop.eup %1771  ;;  %1783 = vtanh.f32 %v579_v34  ;;  %1621 = vmatpush1.bf16.msra.mxu0 %v1620_v20  ;;  %v1741_v20 = vunpack.i.l.bf16 %v1740_v28 }
 0x24c   :  { %v1774_v41 = vpop.eup %1773  ;;  %1785 = vtanh.f32 %v571_v40  ;;  %1622 = vmatprep.subr.bf16.mxu0 %v1879_v60  ;;  %v852_v47 = vmul.f32 %v1772_v23, %v1721_v43  ;;  %v1737_v40 = vunpack.i.h.bf16 %v1735_v31  ;;  %v1736_v23 = vunpack.i.l.bf16 %v1735_v31 }
 0x24d   :  { %v1776_v26 = vpop.eup %1775  ;;  %v850_v57 = vmul.f32 %v1774_v41, %v1716_v45 }
 0x24e   :  { %v1778_v46 = vpop.eup %1777  ;;  %v1583_v29 = vpop.f32.mrb[12].mxu1  ;;  %v853_v32 = vmul.f32 %v1776_v26, %v1722_v42 }
 0x24f   :  { %v592_v50 = vadd.f32 %v1583_v29, %v2509_v55  ;;  %v583_v56 = vpop.f32.mrb[13].mxu1  ;;  %1624 = vmatpush1.bf16.msra.mxu0 %v1623_v17  ;;  %v851_v58 = vmul.f32 %v1778_v46, %v1717_v44 }
 0x250   :  { %v584_v59 = vadd.f32 %v2509_v55, %v583_v56  ;;  %v1584_v62 = vpop.f32.mrb[14].mxu1  ;;  %1625 = vmatprep.subr.bf16.mxu0 %v1879_v60  ;;  %v1629_v63 = vpack.c.bf16 %v853_v32, %v852_v47  ;;  %v1750_v56 = vpop.permute.xlu1 %1749 }
 0x251   :  { %1787 = vtanh.f32 %v592_v50  ;;  %v595_v1 = vadd.f32 %v1584_v62, %v2509_v55  ;;  %v586_v53 = vpop.f32.mrb[15].mxu1  ;;  %v1626_v2 = vpack.c.bf16 %v851_v58, %v850_v57  ;;  %v1745_v62 = vpop.permute.xlu0 %1744 }
 0x252   :  { %1789 = vtanh.f32 %v584_v59  ;;  %v587_v4 = vadd.f32 %v2509_v55, %v586_v53  ;;  %v1752_v53 = vunpack.i.h.bf16 %v1750_v56 }
 0x253   :  { %v1780_v6 = vpop.eup %1779  ;;  %1791 = vtanh.f32 %v595_v1  ;;  %1627 = vmatpush1.bf16.msra.mxu0 %v1626_v2  ;;  %v1751_v2 = vunpack.i.l.bf16 %v1750_v56 }
 0x254   :  { %v1782_v7 = vpop.eup %1781  ;;  %1793 = vtanh.f32 %v587_v4  ;;  %1628 = vmatprep.subr.bf16.mxu0 %v1879_v60  ;;  %v856_v19 = vmul.f32 %v1780_v6, %v1731_v10  ;;  %v1747_v4 = vunpack.i.h.bf16 %v1745_v62  ;;  %v1746_v6 = vunpack.i.l.bf16 %v1745_v62 }
 0x255   :  { %v1784_v12 = vpop.eup %1783  ;;  %v854_v24 = vmul.f32 %v1782_v7, %v1726_v15 }
 0x256   :  { %v1786_v16 = vpop.eup %1785  ;;  %v1587_v18 = vpop.f32.mrb[16].mxu1  ;;  %v857_v21 = vmul.f32 %v1784_v12, %v1732_v9 }
 0x257   :  { %v608_v8 = vadd.f32 %v1587_v18, %v2509_v55  ;;  %v599_v22 = vpop.f32.mrb[17].mxu1  ;;  %1630 = vmatpush1.bf16.msra.mxu0 %v1629_v63  ;;  %v855_v5 = vmul.f32 %v1786_v16, %v1727_v13  ;;  %v1760_v18 = vpop.permute.xlu1 %1759 }
 0x258   :  { %v600_v25 = vadd.f32 %v2509_v55, %v599_v22  ;;  %v1588_v27 = vpop.f32.mrb[18].mxu1  ;;  %1631 = vmatprep.subr.bf16.mxu0 %v1879_v60  ;;  %v1635_v11 = vpack.c.bf16 %v857_v21, %v856_v19  ;;  %v1755_v21 = vpop.permute.xlu0 %1754 }
 0x259   :  { %1795 = vtanh.f32 %v608_v8  ;;  %v611_v37 = vadd.f32 %v1588_v27, %v2509_v55  ;;  %v602_v14 = vpop.f32.mrb[19].mxu1  ;;  %v1632_v30 = vpack.c.bf16 %v855_v5, %v854_v24  ;;  %v1761_v27 = vunpack.i.l.bf16 %v1760_v18 }
 0x25a   :  { %1797 = vtanh.f32 %v600_v25  ;;  %v603_v17 = vadd.f32 %v2509_v55, %v602_v14  ;;  %v1762_v25 = vunpack.i.h.bf16 %v1760_v18  ;;  %v1757_v28 = vunpack.i.h.bf16 %v1755_v21 }
 0x25b   :  { %v1788_v33 = vpop.eup %1787  ;;  %1799 = vtanh.f32 %v611_v37  ;;  %1633 = vmatpush1.bf16.msra.mxu0 %v1632_v30  ;;  %v1756_v37 = vunpack.i.l.bf16 %v1755_v21 }
 0x25c   :  { %v1790_v34 = vpop.eup %1789  ;;  %1801 = vtanh.f32 %v603_v17  ;;  %1634 = vmatprep.subr.bf16.mxu0 %v1879_v60  ;;  %v860_v43 = vmul.f32 %v1788_v33, %v1741_v20 }
 0x25d   :  { %v1792_v39 = vpop.eup %1791  ;;  %v858_v46 = vmul.f32 %v1790_v34, %v1736_v23 }
 0x25e   :  { %v1794_v41 = vpop.eup %1793  ;;  %v1591_v42 = vpop.f32.mrb[20].mxu1  ;;  %v861_v26 = vmul.f32 %v1792_v39, %v1742_v38 }
 0x25f   :  { %v624_v44 = vadd.f32 %v1591_v42, %v2509_v55  ;;  %v615_v45 = vpop.f32.mrb[21].mxu1  ;;  %1636 = vmatpush1.bf16.msra.mxu0 %v1635_v11  ;;  %v859_v29 = vmul.f32 %v1794_v41, %v1737_v40 }
 0x260   :  { %v616_v47 = vadd.f32 %v2509_v55, %v615_v45  ;;  %v1592_v32 = vpop.f32.mrb[22].mxu1  ;;  %1637 = vmatprep.subr.bf16.mxu0 %v1879_v60  ;;  %v1641_v50 = vpack.c.bf16 %v861_v26, %v860_v43 }
 0x261   :  { %1803 = vtanh.f32 %v624_v44  ;;  %v627_v57 = vadd.f32 %v1592_v32, %v2509_v55  ;;  %v618_v58 = vpop.f32.mrb[23].mxu1  ;;  %v1638_v59 = vpack.c.bf16 %v859_v29, %v858_v46 }
 0x262   :  { %1805 = vtanh.f32 %v616_v47  ;;  %v619_v63 = vadd.f32 %v2509_v55, %v618_v58 }
 0x263   :  { %v1796_v0 = vpop.eup %1795  ;;  %1807 = vtanh.f32 %v627_v57  ;;  %1639 = vmatpush1.bf16.msra.mxu0 %v1638_v59 }
 0x264   :  { %v1798_v1 = vpop.eup %1797  ;;  %1809 = vtanh.f32 %v619_v63  ;;  %1640 = vmatprep.subr.bf16.mxu0 %v1879_v60  ;;  %v864_v10 = vmul.f32 %v1796_v0, %v1751_v2 }
 0x265   :  { %v1800_v3 = vpop.eup %1799  ;;  %v862_v55 = vmul.f32 %v1798_v1, %v1746_v6  ;;  %v1269_v1 = vsub.s32 0, %v2403_v61 }
 0x266   :  { %v1802_v7 = vpop.eup %1801  ;;  %v1069_v9 = vpop.f32.mrb[24].mxu1  ;;  %v865_v12 = vmul.f32 %v1800_v3, %v1752_v53 }
 0x267   :  { %1811 = vrcp.f32 %v1069_v9  ;;  %1642 = vmatpush1.bf16.msra.mxu0 %v1641_v50  ;;  %v1071_v13 = vpop.f32.mrb[25].mxu1  ;;  %v863_v15 = vmul.f32 %v1802_v7, %v1747_v4 }
 0x268   :  { %1643 = vmatprep.subr.bf16.mxu0 %v1879_v60  ;;  %v1647_v16 = vpack.c.bf16 %v865_v12, %v864_v10 }
 0x269   :  { %v1644_v19 = vpack.c.bf16 %v863_v15, %v862_v55 }
 0x26a   :  { %v1074_v8 = vpop.f32.mrb[26].mxu1 }
 0x26b   :  { %v1804_v22 = vpop.eup %1803  ;;  %1813 = vrcp.f32 %v1074_v8  ;;  %1645 = vmatpush1.bf16.msra.mxu0 %v1644_v19  ;;  %v1076_v24 = vpop.f32.mrb[27].mxu1 }
 0x26c   :  { %v1806_v5 = vpop.eup %1805  ;;  %1646 = vmatprep.subr.bf16.mxu0 %v1879_v60  ;;  %v868_v31 = vmul.f32 %v1804_v22, %v1761_v27 }
 0x26d   :  { %v1808_v11 = vpop.eup %1807  ;;  %v866_v33 = vmul.f32 %v1806_v5, %v1756_v37 }
 0x26e   :  { %v1810_v14 = vpop.eup %1809  ;;  %v1079_v30 = vpop.f32.mrb[28].mxu1  ;;  %v869_v17 = vmul.f32 %v1808_v11, %v1762_v25 }
 0x26f   :  { %1815 = vrcp.f32 %v1079_v30  ;;  %1648 = vmatpush1.bf16.msra.mxu0 %v1647_v16  ;;  %v867_v34 = vmul.f32 %v1810_v14, %v1757_v28  ;;  %v1081_v38 = vpop.f32.mrb[29].mxu1 }
 0x270   :  { %1649 = vmatprep.subr.bf16.mxu0 %v1879_v60  ;;  %v1653_v20 = vpack.c.bf16 %v869_v17, %v868_v31 }
 0x271   :  { %v1812_v39 = vpop.eup %1811  ;;  %v1650_v40 = vpack.c.bf16 %v867_v34, %v866_v33 }
 0x272   :  { %1088 = vperm.xlu1 %1702, %v1812_v39  }
 0x273   :  { %1651 = vmatpush1.bf16.msra.mxu0 %v1650_v40 }
 0x274   :  { %1652 = vmatprep.subr.bf16.mxu0 %v1879_v60 }
 0x275   :  { %v1814_v23 = vpop.eup %1813 }
 0x276   :  { %1093 = vperm.xlu1 %1702, %v1814_v23  }
 0x277   :  { %1654 = vmatpush1.bf16.msra.mxu0 %v1653_v20 }
 0x278   :  { %1593 = vmatprep.subr.mxu0 %v1878_v49 }
 0x279   :  { %v1816_v41 = vpop.eup %1815 }
 0x27a   :  { %1098 = vperm.xlu0 %1701, %v1816_v41   ;;  %1410 = vmatmul.mubr.msk.f32.vlgmr.msra.gmra.mrb[24].mxu0 %vm2474_vm14, %v1881_v51 }
 0x27b   :  { %1411 = vmatprep.mubr.msk.f32.mxu0 %vm200_vm2, %v2479_v35 }
 0x27e   :  { %1412 = vmatmul.mubr.msk.f32.gmra.mrb[26].mxu0 %vm2487_vm1, %v1881_v51 }
 0x27f   :  { %1413 = vmatprep.mubr.msk.f32.mxu0 %vm200_vm2, %v2492_v52  ;;  %vm1273_vm2 = vcmask 64512  }
 0x282   :  { %1414 = vmatmul.mubr.msk.f32.gmra.mrb[28].mxu0 %vm2499_vm5, %v1881_v51 }
 0x283   :  { %1595 = vmatprep.mubr.msk.f32.mxu0 %vm1882_vm7, %v1878_v49 }
 0x2f1   :  { %v1089_v60 = vpop.permute.xlu1 %1088 }
 0x2f5   :  { %v1094_v26 = vpop.permute.xlu1 %1093 }
 0x2f9   :  { %v1099_v54 = vpop.permute.xlu0 %1098 }
 0x34d   :  { %v989_v48 = vpop.f32.mrb[24].mxu0 }
 0x34e   :  { %v1101_v42 = vmul.f32 %v1089_v60, %v989_v48  ;;  %v991_v43 = vpop.f32.mrb[25].mxu0 }
 0x350   :  { %1104 = vst [vmem:[#allocation2] sm:$0xff] %v1101_v42  ;;  %v1107_v35 = vmul.f32 %v1101_v42, %v1101_v42 }
 0x351   :  { %v994_v36 = vpop.f32.mrb[26].mxu0 }
 0x352   :  { %v1102_v44 = vmul.f32 %v1094_v26, %v994_v36  ;;  %1108 = vadd.xlane.f32.xlu0 %v1107_v35  ;;  %v996_v45 = vpop.f32.mrb[27].mxu0 }
 0x354   :  { %1105 = vst [vmem:[#allocation2 + $0x8] sm:$0xff] %v1102_v44  ;;  %v1190_v52 = vmul.f32 %v1102_v44, %v1101_v42  ;;  %v1112_v46 = vmul.f32 %v1102_v44, %v1102_v44 }
 0x355   :  { %v999_v29 = vpop.f32.mrb[28].mxu0 }
 0x356   :  { %v1103_v47 = vmul.f32 %v1099_v54, %v999_v29  ;;  %1191 = vadd.xlane.f32.xlu0 %v1190_v52  ;;  %1113 = vadd.xlane.f32.xlu1 %v1112_v46  ;;  %v1001_v32 = vpop.f32.mrb[29].mxu0 }
 0x358   :  { %1106 = vst [vmem:[#allocation2 + $0x10] sm:$0xff] %v1103_v47  ;;  %v1117_v50 = vmul.f32 %v1103_v47, %v1103_v47 }
 0x35a   :  { %1594 = vmatpush3.xpose.msra.mxu0 %v1117_v50 }
 0x35b   :  { %1598 = vmatprep.subr.mxu0 %v1878_v49 }
 0x35d   :  { %1596 = vmatmul.mubr.f32.vlgmr.msra.gmra.mrb[30].mxu0 %v1881_v51 }
 0x35e   :  { %1599 = vmatpush3.xpose.msra.mxu0 %v1103_v47  ;;  %1600 = vmatprep.mubr.msk.f32.mxu0 %vm1882_vm7, %v1878_v49 }
 0x361   :  { %1601 = vmatmul.mubr.f32.vlgmr.msra.gmra.mrb[32].mxu0 %v1101_v42 }
 0x3df   :  { %v1109_v56 = vpop.xlane.xlu0 %1108 }
 0x3e0   :  { %v1110_v57 = vmax.f32 %v1109_v56, 1e-16 }
 0x3e2   :  { %1817 = vrsqrt.f32 %v1110_v57 }
 0x3e3   :  { %v1114_v7 = vpop.xlane.xlu1 %1113  ;;  %v1192_v12 = vpop.xlane.xlu0 %1191 }
 0x3e4   :  { %v1115_v9 = vmax.f32 %v1114_v7, 1e-16 }
 0x3ec   :  { %v1818_v53 = vpop.eup %1817 }
 0x3ed   :  { %v1193_v13 = vmul.f32 %v1818_v53, %v1192_v12 }
 0x430   :  { %v1184_v58 = vpop.f32.mrb[30].mxu0 }
 0x431   :  { %v1188_v59 = vmax.f32 %v1184_v58, 1e-16  ;;  %v1597_v62 = vpop.f32.mrb[31].mxu0 }
 0x433   :  { %1819 = vrsqrt.f32 %v1188_v59 }
 0x434   :  { %v1262_v63 = vpop.f32.mrb[32].mxu0  ;;  %1821 = vrsqrt.f32 %v1115_v9 }
 0x435   :  { %v1602_v0 = vpop.f32.mrb[33].mxu0  ;;  %v1266_v3 = vmul.f32 %v1818_v53, %v1262_v63 }
 0x43d   :  { %v1820_v2 = vpop.eup %1819 }
 0x43e   :  { %v1270_v51 = vrot.slane %v1820_v2, %v1269_v1  ;;  %v1822_v10 = vpop.eup %1821 }
 0x43f   :  { %v1194_v55 = vmul.f32 %v1822_v10, %v1193_v13 }
 0x440   :  { %v1271_v4 = vmul.f32 %v1270_v51, %v1266_v3 }
 0x441   :  { %v1195_v15 = vmul.f32 20.0, %v1194_v55 }
 0x442   :  { %v1272_v6 = vmul.f32 20.0, %v1271_v4 }
 0x444   :  { %v1274_v49 = vsel %vm1273_vm2, %v1272_v6, -inf }
 0x445   :  { %1275 = vmax.xlane.f32.xlu0 %v1274_v49 }
 0x4d2   :  { %v1276_v16 = vpop.xlane.xlu0 %1275 }
 0x4d3   :  { %v1277_v61 = vmax.f32 %v1195_v15, %v1276_v16 }
 0x4d5   :  { %v1281_v18 = vsub.f32 %v1272_v6, %v1277_v61 }
 0x4d7   :  { %v1282_v19 = vmul.f32 1.442695, %v1281_v18 }
 0x4d9   :  { %1823 = vpow2.f32 %v1282_v19 }
 0x4e3   :  { %v1824_v21 = vpop.eup %1823 }
 0x4e4   :  { %v1284_v8 = vsel %vm1273_vm2, %v1824_v21, 0.0 }
 0x4e5   :  { %1285 = vadd.xlane.f32.xlu0 %v1284_v8 }
 0x4e6   :  { %1840 = shalt.err (!%p1837_p4)
}
 0x4e7   :  { %s1841_s15 = scalar_lea.hbm %s2597_s4, 384 }
 0x4e8   :  { %p1842_p5 = scmp.ne.s32.totalorder %s2597_s4, %s1841_s15  ;;  %p1845_p6 = scmp.lt.u32.totalorder %s1841_s15, %s2597_s4 }
 0x4ea   :  { %p1847_p7 = pnand %p1845_p6, %p1842_p5 }
 0x4ec   :  { %1850 = shalt.err (!%p1847_p7)
}
 0x4ed   :  { %s1884_s19 = smov 128   ;;  %s1885_s20 = smov 8   ;;  %v1278_v22 = vsub.f32 %v1195_v15, %v1277_v61 }
 0x4ee   :  { %1311 = dma.vmem_to_hbm [thread:$0]  %s1306_s11, 384, %s2597_s4, [#allocation3], %s1884_s19, %s1884_s19, %s1885_s20  }
 0x4ef   :  { %v1279_v24 = vmul.f32 1.442695, %v1278_v22  ;;  %s1886_s23 = smov [#allocation4]  }
 0x4f0   :  { %s1318_s24 = sshll.u32 %s1886_s23, 4  ;;  %s1319_s24 = int_to_ptr.vmem [resolvable:$true] %s1318_s24 }
 0x4f1   :  { %1825 = vpow2.f32 %v1279_v24  ;;  %s1851_s4 = scalar_lea.vmem %s1319_s24, 16  ;;  %s1855_s25 = scalar_lea.vmem %s1319_s24, 32 }
 0x4f2   :  { %p1852_p8 = scmp.ne.s32.totalorder %s1319_s24, %s1851_s4  ;;  %p1856_p9 = scmp.lt.s32.totalorder %s1319_s24, %s1319_s24 }
 0x4f3   :  { %p1857_p10 = scmp.lt.s32.totalorder %s1855_s25, %s1851_s4 }
 0x4f5   :  { %p1858_p11 = por %p1857_p10, %p1856_p9 }
 0x4f7   :  { %p1859_p12 = pnand %p1858_p11, %p1852_p8 }
 0x4fb   :  { %v1826_v5 = vpop.eup %1825 }
 0x572   :  { %v1286_v25 = vpop.xlane.xlu0 %1285 }
 0x573   :  { %v1287_v27 = vadd.f32 %v1826_v5, %v1286_v25 }
 0x575   :  { %1827 = vlog2.f32 %v1287_v27 }
 0x57f   :  { %v1828_v11 = vpop.eup %1827 }
 0x580   :  { %v1289_v28 = vmul.f32 0.6931472, %v1828_v11 }
 0x582   :  { %v1290_v37 = vadd.f32 %v1289_v28, %v1277_v61 }
 0x584   :  { %v1291_v14 = vsub.f32 %v1290_v37, %v1195_v15 }
 0x586   :  { %v1292_v30 = vrot.slane %v1291_v14, 4 }
 0x588   :  { %v1293_v31 = vadd.f32 %v1292_v30, %v1291_v14 }
 0x58a   :  { %v1294_v17 = vrot.slane %v1293_v31, 2 }
 0x58c   :  { %v1295_v33 = vadd.f32 %v1294_v17, %v1293_v31 }
 0x58e   :  { %v1296_v34 = vrot.slane %v1295_v33, 1 }
 0x590   :  { %v1297_v38 = vadd.f32 %v1296_v34, %v1295_v33 }
 0x592   :  { %v1298_v20 = vmul.f32 0.125, %v1297_v38 }
 0x594   :  { %1299 = vst [vmem:[#allocation4] sm:$0x1] %v1298_v20 }
 0x595   :  { %1862 = shalt.err (!%p1859_p12)
}
 0x596   :  { %s1863_s28 = scalar_lea.hbm %s2598_s5, 16 }
 0x597   :  { %p1864_p13 = scmp.ne.s32.totalorder %s2598_s5, %s1863_s28  ;;  %p1867_p0 = scmp.lt.u32.totalorder %s1863_s28, %s2598_s5 }
 0x599   :  { %p1869_p1 = pnand %p1867_p0, %p1864_p13 }
 0x59b   :  { %1872 = shalt.err (!%p1869_p1)
}
 0x59c   :  { %1321 = dma.vmem_to_hbm [thread:$0]  %s1319_s24, 16, %s2598_s5, [#allocation5]  }
 0x59d   :  { %1873 = dma.done.wait [#allocation3], 384  }
 0x59e   :  { %1874 = vsyncadd [#allocation3], 4294966912 }
 0x59f   :  { %1875 = dma.done.wait [#allocation5], 16  }
 0x5a0   :  { %1876 = vsyncadd [#allocation5], 4294967280 }
 0x5a1   :  { %1328 = vsyncpa [#allocation3], 1 }
 0x5a2   :  { %1329 = vsyncpa [#allocation5], 1 }

</bundles_post_ra>
